<compile_context>
chip_gen: v6e
topology: v6e:2x2x1
jax: 0.10.0
libtpu: 0.0.40
codegen_flags: <defaults>
</compile_context>

<pallas_src>
import jax
import jax.numpy as jnp
from jax.experimental import pallas as pl
from jax.experimental.pallas import tpu as pltpu


def _rope_kernel_full(pos_ref, inv_ref, cos_ref, sin_ref):
    # pos_ref: (TS, 1)  f32  -- positions for this (batch, seq-tile), sublane-major
    # inv_ref: (1, dim) f32  -- inv_freq already duplicated to full width (lane-dense)
    # cos_ref/sin_ref: (TS, dim) in x.dtype (batch dim squeezed)
    freqs = pos_ref[...] * inv_ref[...]              # (TS, 1) x (1, dim) -> (TS, dim)
    cos_ref[...] = jnp.cos(freqs).astype(cos_ref.dtype)   # one unmasked full-width store
    sin_ref[...] = jnp.sin(freqs).astype(sin_ref.dtype)


def _rope_kernel_half(pos_ref, inv_ref, cos_ref, sin_ref):
    # Used only when half = dim//2 >= 128 lanes, where half-width transcendentals
    # genuinely halve EUP work and both half-stores are lane-aligned and unmasked.
    half = inv_ref.shape[-1]
    freqs = pos_ref[...] * inv_ref[...]              # (TS, half)
    cos_h = jnp.cos(freqs).astype(cos_ref.dtype)
    sin_h = jnp.sin(freqs).astype(sin_ref.dtype)
    cos_ref[:, :half] = cos_h
    cos_ref[:, half:] = cos_h
    sin_ref[:, :half] = sin_h
    sin_ref[:, half:] = sin_h


def llama_rotary_embedding(x, position_ids, dim, base=10000.0, scaling_factor=1.0,
                           seq_tile=None):
    """Returns (cos, sin) with shape (B, S, dim) and dtype == x.dtype."""
    B, S = position_ids.shape
    half = dim // 2
    out_dtype = x.dtype

    # ---- parameter / input setup (glue, plain JAX; matches torch __init__) ----
    inv_freq = 1.0 / (base ** (jnp.arange(0, dim, 2, dtype=jnp.float32) / dim))  # (half,)
    # /scaling_factor is a no-op at the default 1.0 (base-class forward ignores it).
    pos_f32 = (position_ids.astype(jnp.float32) / scaling_factor).reshape(B, S, 1)

    use_half = half >= 128
    if use_half:
        kernel = _rope_kernel_half
        inv_in = inv_freq.reshape(1, half)
        compute_w = half
    else:
        kernel = _rope_kernel_full
        inv_in = jnp.concatenate([inv_freq, inv_freq]).reshape(1, dim)   # lane-dense
        compute_w = dim

    # ---- sequence-tile size: large tiles amortize per-step pipeline overhead ----
    if seq_tile is None:
        TS = S if S <= 4096 else 4096
    else:
        TS = min(int(seq_tile), S)
    if TS != S:
        TS = max(8, (TS // 8) * 8)          # second-to-last block dim must be 8-aligned
    n_s_tiles = pl.cdiv(S, TS)

    # ---- generation-aware VMEM budget ----
    itemsize = jnp.dtype(out_dtype).itemsize
    out_buf_bytes = 2 * 2 * TS * dim * itemsize          # 2 outputs x double buffer
    interm_bytes = 3 * TS * compute_w * 4                # freqs + cos + sin (f32, pre-cast)
    misc_bytes = 2 * 2 * TS * 4 + 2 * compute_w * 4 + (2 << 20)  # pos/inv bufs + scratch
    vmem_needed = out_buf_bytes + interm_bytes + misc_bytes
    try:
        phys_vmem = getattr(pltpu.get_tpu_info(), "vmem_capacity_bytes", 64 << 20)
    except Exception:  # pragma: no cover - conservative fallback off-TPU / old jax
        phys_vmem = 64 << 20
    vmem_limit = int(min(max(vmem_needed, 16 << 20), (phys_vmem * 3) // 4))

    pos_spec = pl.BlockSpec((pl.Squeezed(), TS, 1), lambda b, s: (b, s, 0))   # (TS, 1)
    inv_spec = pl.BlockSpec((1, compute_w), lambda b, s: (0, 0))              # shared
    out_spec = pl.BlockSpec((pl.Squeezed(), TS, dim), lambda b, s: (b, s, 0))  # (TS, dim)

    cos, sin = pl.pallas_call(
        kernel,
        out_shape=(
            jax.ShapeDtypeStruct((B, S, dim), out_dtype),
            jax.ShapeDtypeStruct((B, S, dim), out_dtype),
        ),
        grid_spec=pltpu.PrefetchScalarGridSpec(
            num_scalar_prefetch=0,
            grid=(B, n_s_tiles),
            in_specs=[pos_spec, inv_spec],
            out_specs=[out_spec, out_spec],
        ),
        compiler_params=pltpu.CompilerParams(
            dimension_semantics=("parallel", "parallel"),
            vmem_limit_bytes=vmem_limit,
        ),
    )(pos_f32, inv_in)

    return cos, sin


if __name__ == "__main__":
    def ref_rope(position_ids, dim, base, dtype):
        inv = 1.0 / (base ** (jnp.arange(0, dim, 2, dtype=jnp.float32) / dim))
        freqs = position_ids.astype(jnp.float32)[:, :, None] * inv[None, None, :]
        emb = jnp.concatenate([freqs, freqs], axis=-1)
        return jnp.cos(emb).astype(dtype), jnp.sin(emb).astype(dtype)

    key = jax.random.PRNGKey(0)

    # Case 1: small baseline (full-width path, dim < 128 lanes).
    B, S, dim, hidden = 2, 8, 64, 64
    x = jax.random.normal(key, (B, S, hidden), dtype=jnp.float32)
    pos = jnp.broadcast_to(jnp.arange(S, dtype=jnp.int32)[None, :], (B, S))
    cos, sin = llama_rotary_embedding(x, pos, dim=dim, base=10000.0)
    jax.block_until_ready((cos, sin))
    cr, sr = ref_rope(pos, dim, 10000.0, x.dtype)
    assert cos.shape == (B, S, dim) and sin.shape == (B, S, dim)
    assert cos.dtype == x.dtype and sin.dtype == x.dtype
    assert jnp.allclose(cos, cr, atol=1e-5) and jnp.allclose(sin, sr, atol=1e-5)

    # Case 2: Llama head_dim=128, bf16 output, S % TS != 0 (partial last seq tile).
    B2, S2, dim2 = 2, 20, 128
    x2 = jax.random.normal(key, (B2, S2, dim2), dtype=jnp.bfloat16)
    pos2 = jnp.broadcast_to(jnp.arange(S2, dtype=jnp.int32)[None, :], (B2, S2))
    cos2, sin2 = llama_rotary_embedding(x2, pos2, dim=dim2, seq_tile=16)
    jax.block_until_ready((cos2, sin2))
    cr2, sr2 = ref_rope(pos2, dim2, 10000.0, x2.dtype)
    assert cos2.dtype == jnp.bfloat16 and sin2.dtype == jnp.bfloat16
    assert jnp.allclose(cos2.astype(jnp.float32), cr2.astype(jnp.float32), atol=1e-2)
    assert jnp.allclose(sin2.astype(jnp.float32), sr2.astype(jnp.float32), atol=1e-2)

    # Case 3: dim >= 256 exercises the half-width-compute path (half = 128 lanes).
    B3, S3, dim3 = 1, 16, 256
    x3 = jax.random.normal(key, (B3, S3, dim3), dtype=jnp.float32)
    pos3 = jnp.broadcast_to(jnp.arange(S3, dtype=jnp.int32)[None, :], (B3, S3))
    cos3, sin3 = llama_rotary_embedding(x3, pos3, dim=dim3)
    jax.block_until_ready((cos3, sin3))
    cr3, sr3 = ref_rope(pos3, dim3, 10000.0, x3.dtype)
    assert jnp.allclose(cos3, cr3, atol=1e-5) and jnp.allclose(sin3, sr3, atol=1e-5)

    print("KERNEL_OK")
</pallas_src>

<mosaic_0001>
module attributes {stable_mosaic.version = 11 : i64} {
  func.func @_rope_kernel_full(%arg0: i32, %arg1: i32, %arg2: memref<1x8x1xf32, #tpu.memory_space<vmem>>, %arg3: memref<1x64xf32, #tpu.memory_space<vmem>>, %arg4: memref<1x8x64xf32, #tpu.memory_space<vmem>>, %arg5: memref<1x8x64xf32, #tpu.memory_space<vmem>>) attributes {dimension_semantics = [#tpu.dimension_semantics<parallel>, #tpu.dimension_semantics<parallel>], iteration_bounds = array<i64: 2, 1>, scalar_prefetch = 0 : i64, scratch_operands = 0 : i64, tpu.core_type = #tpu.core_type<tc>, window_params = [{transform_indices = @transform_0, window_bounds = array<i64: 1, 8, 1>}, {pipeline_mode = #tpu.pipeline_mode<synchronous>, transform_indices = @transform_1, window_bounds = array<i64: 1, 64>}, {transform_indices = @transform_2, window_bounds = array<i64: 1, 8, 64>}, {transform_indices = @transform_3, window_bounds = array<i64: 1, 8, 64>}]} {
    %c0 = arith.constant 0 : index
    %c0_0 = arith.constant 0 : index
    %c0_1 = arith.constant 0 : index
    %0 = vector.load %arg2[%c0, %c0_0, %c0_1] : memref<1x8x1xf32, #tpu.memory_space<vmem>>, vector<1x8x1xf32>
    %1 = vector.shape_cast %0 : vector<1x8x1xf32> to vector<8x1xf32>
    %c0_2 = arith.constant 0 : index
    %c0_3 = arith.constant 0 : index
    %2 = vector.load %arg3[%c0_2, %c0_3] : memref<1x64xf32, #tpu.memory_space<vmem>>, vector<1x64xf32>
    %3 = vector.broadcast %1 : vector<8x1xf32> to vector<8x64xf32>
    %4 = vector.broadcast %2 : vector<1x64xf32> to vector<8x64xf32>
    %5 = arith.mulf %3, %4 : vector<8x64xf32>
    %6 = math.cos %5 : vector<8x64xf32>
    %c0_4 = arith.constant 0 : index
    %c0_5 = arith.constant 0 : index
    %c0_6 = arith.constant 0 : index
    %7 = vector.load %arg4[%c0_4, %c0_5, %c0_6] : memref<1x8x64xf32, #tpu.memory_space<vmem>>, vector<1x8x64xf32>
    %8 = vector.shape_cast %7 : vector<1x8x64xf32> to vector<8x64xf32>
    %9 = vector.shape_cast %6 : vector<8x64xf32> to vector<1x8x64xf32>
    tpu.vector_store %arg4[%c0_4, %c0_5, %c0_6], %9 {strides = array<i32>} : memref<1x8x64xf32, #tpu.memory_space<vmem>>, vector<1x8x64xf32>,
    %10 = math.sin %5 : vector<8x64xf32>
    %c0_7 = arith.constant 0 : index
    %c0_8 = arith.constant 0 : index
    %c0_9 = arith.constant 0 : index
    %11 = vector.load %arg5[%c0_7, %c0_8, %c0_9] : memref<1x8x64xf32, #tpu.memory_space<vmem>>, vector<1x8x64xf32>
    %12 = vector.shape_cast %11 : vector<1x8x64xf32> to vector<8x64xf32>
    %13 = vector.shape_cast %10 : vector<8x64xf32> to vector<1x8x64xf32>
    tpu.vector_store %arg5[%c0_7, %c0_8, %c0_9], %13 {strides = array<i32>} : memref<1x8x64xf32, #tpu.memory_space<vmem>>, vector<1x8x64xf32>,
    return
  }
  func.func @transform_0(%arg0: i32, %arg1: i32) -> (i32, i32, i32) {
    %c0_i32 = arith.constant 0 : i32
    %c0_i32_0 = arith.constant 0 : i32
    return %arg0, %arg1, %c0_i32 : i32, i32, i32
  }
  func.func @transform_1(%arg0: i32, %arg1: i32) -> (i32, i32) {
    %c0_i32 = arith.constant 0 : i32
    %c0_i32_0 = arith.constant 0 : i32
    %c0_i32_1 = arith.constant 0 : i32
    return %c0_i32, %c0_i32_0 : i32, i32
  }
  func.func @transform_2(%arg0: i32, %arg1: i32) -> (i32, i32, i32) {
    %c0_i32 = arith.constant 0 : i32
    %c0_i32_0 = arith.constant 0 : i32
    return %arg0, %arg1, %c0_i32 : i32, i32, i32
  }
  func.func @transform_3(%arg0: i32, %arg1: i32) -> (i32, i32, i32) {
    %c0_i32 = arith.constant 0 : i32
    %c0_i32_0 = arith.constant 0 : i32
    return %arg0, %arg1, %c0_i32 : i32, i32, i32
  }
}

</mosaic_0001>

<bundles_post_ra>
// kernel: tpu_custom_call.1
= control target key start
LH: loop header
LB: loop body
LE: loop exit
PB: predicated region body
PF: predicated region fallthrough
CT: control target
= control target key end

     0   :  { %9 = vsyncpa [#allocation3], 0  ;;  %s971_s0 = inlined_call_operand.vmem [shape: f32[2,8,1], index: 0, kind: input, shape index: {}]   ;;  %s972_s1 = inlined_call_operand.vmem [shape: f32[1,64], index: 1, kind: input, shape index: {}]   ;;  %s973_s2 = inlined_call_operand.hbm [shape: f32[2,8,64], index: 2, kind: output, shape index: {0}]   ;;  %s974_s3 = inlined_call_operand.hbm [shape: f32[2,8,64], index: 3, kind: output, shape index: {1}]  }
   0x1   :  { %11 = vsyncpa [#allocation3 + $0x1], 0 }
   0x2   :  { %12 = vsyncpa [#allocation5], 0 }
   0x3   :  { %14 = vsyncpa [#allocation5 + $0x1], 0  ;;  %s802_s12 = smov 0   ;;  %s804_s13 = smov 0  }
   0x4   :  { %s806_s14 = smov 0   ;;  %s808_s15 = smov 0  }
   0x5   :  { %s810_s16 = smov 0   ;;  %s812_s17 = smov 0  }
   0x6 LB: > { %s566_s18 = sadd.s32 4294967295, %s771_s17   ;;  %s567_s19 = sadd.s32 4294967294, %s771_s17   ;;  %s771_s17 = sphi %s812_s17, %s20_s17   ;;  %s767_s16 = sphi %s810_s16, %s981_s16   ;;  %s763_s15 = sphi %s808_s15, %s980_s15   ;;  %s759_s14 = sphi %s806_s14, %s979_s14   ;;  %s755_s13 = sphi %s804_s13, %s978_s13   ;;  %s751_s12 = sphi %s802_s12, %s977_s12  }
   0x7   : > { %s32_s20 = sadd.s32 1, %s767_s16  ;;  %s90_s21 = sadd.s32 1, %s759_s14 }
   0x8   : > { %p34_p0 = scmp.ge.s32.totalorder %s32_s20, 2  ;;  %p100_p1 = scmp.ne.s32.totalorder %s759_s14, %s755_s13 }
   0x9   : > { %p101_p2 = scmp.eq.s32.totalorder %s566_s18, 1  ;;  %p106_p3 = scmp.ne.s32.totalorder %s755_s13, %s751_s12 }
   0xa   : > { %s983_s20 = smov (%p34_p0, %s32_s20), 0  ;;  %p107_p5 = scmp.eq.s32.totalorder %s567_s19, 1 }
   0xb   : > { %p842_p4 = por %p101_p2, %p100_p1  ;;  %s85_s23 = ssub.s32 %s767_s16, %s983_s20 }
   0xc   : > { %p570_p6 = scmp.ge.s32.totalorder %s771_s17, 1  ;;  %p88_p7 = scmp.eq.s32.totalorder %s85_s23, 0 }
   0xd   : > { %p849_p8 = por %p107_p5, %p106_p3  ;;  %p166_p9 = scmp.lt.s32.totalorder %s771_s17, 3 }
   0xe   : > { %s855_s25 = scalar_select %p88_p7, %s759_s14, %s90_s21  }
   0xf   : > { %p167_p10 = pnand %p570_p6, %p166_p9 }
  0x10   : > { %p197_p11 = scmp.lt.s32.totalorder (!%p167_p10), %s763_s15, 1  ;;  %s886_s6 = sand.u32 (!%p167_p10), 1, %s755_s13  }
  0x11   : > { %170 = sbr.rel (%p167_p10) target bundleno = 270 (0x10e), region = 28  ;;  %s571_s7 = sshll.u32 (!%p167_p10), %s886_s6, 3 }
  0x12   : > { %s585_s8 = sshll.u32 (!%p167_p10), %s763_s15, 7  ;;  %s189_s9 = scalar_lea.vmem (!%p167_p10), [#allocation2], %s571_s7 }
  0x13   : > { %s448_s10 = sshll.u32 (!%p167_p10), %s189_s9, 4  ;;  %s196_s11 = scalar_lea.vmem (!%p167_p10), [#allocation4], %s571_s7  ;;  %s896_s10 = int_to_ptr.vmem [resolvable:$true] %s448_s10 }
  0x14   : > { %s462_s18 = sshll.u32 (!%p167_p10), %s196_s11, 4  ;;  %s893_s23 = scalar_lea.hbm (!%p167_p10), %s973_s2, %s585_s8  ;;  %s903_s18 = int_to_ptr.vmem [resolvable:$true] %s462_s18 }
  0x15   : > { %s429_s28 = scalar_lea.sflag (!%p167_p10), [#allocation3], %s886_s6  ;;  %s665_s29 = scalar_lea.vmem (!%p167_p10), %s896_s10, 128 }
  0x16   : > { %v773_v0 = vmov 0   ;;  %s198_s26 = scalar_select %p197_p11, %s763_s15, 1  ;;  %v574_v2 = vld [vmem:[%s972_s1] ss:$0 sm:$0xff]  ;;  %v774_v15 = vmov 683565275  }
  0x17   : > { %660 = vset.pattern.permute.xlu0 %v773_v0  ;;  %v775_v17 = vmov 2475754826   ;;  %v776_v20 = vmov 2131351028   ;;  %v777_v23 = vmov 2102212464   ;;  %p666_p12 = scmp.ne.s32.totalorder %s896_s10, %s665_s29 }
  0x18   : > { %s573_s27 = sshll.u32 %s198_s26, 3  ;;  %v778_v26 = vmov 920167782   ;;  %v779_v29 = vmov 1326507024   ;;  %vm321_vm10 = vcmask 523264  }
  0x19   : > { %s203_s30 = scalar_lea.vmem %s971_s0, %s573_s27  ;;  %s901_s27 = scalar_lea.hbm %s974_s3, %s585_s8 }
  0x1a   : > { %v204_v1 = vld [vmem:[%s203_s30] sm:$0xff]  ;;  %p667_p13 = pnand %p666_p12, %p842_p4  ;;  %s780_s30 = smov [#allocation2]  }
  0x1b   : > { %208 = vperm.xlu0 %660, %v204_v1   ;;  %s669_s4 = sshll.u32 %s780_s30, 4  ;;  %s670_s4 = int_to_ptr.vmem [resolvable:$false] %s669_s4 }
  0x1c   : > { %p668_p0 = pneg %p667_p13  ;;  %s671_s5 = scalar_lea.vmem %s670_s4, 256 }
  0x1d   : > { %p672_p1 = scmp.lt.s32.totalorder %s896_s10, %s670_s4  ;;  %p673_p2 = scmp.lt.s32.totalorder %s671_s5, %s665_s29 }
  0x1f   : > { %p674_p3 = por %p673_p2, %p672_p1 }
  0x21   : > { %p675_p5 = pnand %p674_p3, %p668_p0 }
  0x96   : > { %v209_v3 = vpop.permute.xlu0 %208 }
  0x97   : > { %v865_v4 = vmul.f32 %v574_v2, %v209_v3 }
  0x99   : > { %v221_v5 = vand.u32 2139095040, %v865_v4  ;;  %v218_v9 = vand.u32 2147483647, %v865_v4  ;;  %vm220_vm7 = vcmp.lt.s32.totalorder %v865_v4, 0 }
  0x9b   : > { %v222_v6 = vshrl.u32 %v221_v5, 23  ;;  %v225_v12 = vand.u32 8388607, %v218_v9  ;;  %vm219_vm8 = vcmp.le.f32.partialorder %v218_v9, 0.7853982 }
  0x9d   : > { %v575_v7 = vadd.s32 4294967169, %v222_v6  ;;  %v226_v31 = vor.u32 8388608, %v225_v12 }
  0x9f   : > { %v228_v8 = vadd.s32 1, %v575_v7  ;;  %v266_v45 = vshll.u32 %v226_v31, 8 }
  0xa1   : > { %vm229_vm0 = vcmp.gt.s32.totalorder %v228_v8, 0 }
  0xa2   : > { %v230_v10 = vsel %vm229_vm0, %v228_v8, 0  ;;  %vm310_vm0 = vweird.f32 %v865_v4 }
  0xa3   : > { %v232_v11 = vand.u32 31, %v230_v10  ;;  %v231_v14 = vshrl.u32 %v230_v10, 5 }
  0xa5   : > { %v233_v13 = vsub.s32 32, %v232_v11  ;;  %v235_v16 = vshll.u32 %v774_v15, %v232_v11  ;;  %v238_v18 = vshll.u32 %v775_v17, %v232_v11  ;;  %v241_v22 = vshll.u32 %v776_v20, %v232_v11 }
  0xa6   : > { %v244_v25 = vshll.u32 %v777_v23, %v232_v11  ;;  %v247_v28 = vshll.u32 %v778_v26, %v232_v11  ;;  %vm250_vm1 = vcmp.lt.s32.totalorder %v231_v14, 1  ;;  %vm253_vm2 = vcmp.lt.s32.totalorder %v231_v14, 4 }
  0xa7   : > { %v236_v19 = vshrl.u32 %v775_v17, %v233_v13  ;;  %v239_v21 = vshrl.u32 %v776_v20, %v233_v13  ;;  %v242_v24 = vshrl.u32 %v777_v23, %v233_v13  ;;  %v245_v27 = vshrl.u32 %v778_v26, %v233_v13 }
  0xa8   : > { %v248_v30 = vshrl.u32 %v779_v29, %v233_v13  ;;  %v234_v40 = vshrl.u32 %v774_v15, %v233_v13  ;;  %vm252_vm3 = vcmp.lt.s32.totalorder %v231_v14, 3  ;;  %vm251_vm4 = vcmp.lt.s32.totalorder %v231_v14, 2 }
  0xa9   : > { %v237_v32 = vor.u32 %v236_v19, %v235_v16  ;;  %v240_v33 = vor.u32 %v239_v21, %v238_v18  ;;  %v243_v34 = vor.u32 %v242_v24, %v241_v22  ;;  %v246_v35 = vor.u32 %v245_v27, %v244_v25 }
  0xaa   : > { %v249_v36 = vor.u32 %v248_v30, %v247_v28 }
  0xab   : > { %v255_v37 = vsel %vm253_vm2, %v243_v34, 2102212464  ;;  %v258_v38 = vsel %vm250_vm1, %v237_v32, %v240_v33  ;;  %v262_v39 = vsel %vm250_vm1, %v240_v33, %v243_v34  ;;  %v259_v41 = vsel %vm253_vm2, %v246_v35, 920167782 }
  0xac   : > { %v263_v42 = vsel %vm253_vm2, %v249_v36, 1326507024  ;;  %v260_v43 = vsel %vm252_vm3, %v243_v34, %v259_v41  ;;  %v254_v46 = vsel %vm250_vm1, %v234_v40, %v237_v32  ;;  %v256_v47 = vsel %vm252_vm3, %v240_v33, %v255_v37 }
  0xad   : > { %v264_v44 = vsel %vm252_vm3, %v246_v35, %v263_v42  ;;  %v261_v48 = vsel %vm251_vm4, %v258_v38, %v260_v43  ;;  %v257_v54 = vsel %vm251_vm4, %v254_v46, %v256_v47 }
  0xae   : > { %v265_v49 = vsel %vm251_vm4, %v262_v39, %v264_v44  ;;  %v874_v52 = vmul.u32.u64.low %v266_v45, %v261_v48  ;;  %v875_v53 = vmul.u32.u64.high %v266_v45, %v261_v48, %v874_v52  ;;  %v273_v56 = vmul.u32 %v266_v45, %v257_v54 }
  0xaf   : > { %v871_v50 = vmul.u32.u64.low %v266_v45, %v265_v49  ;;  %v872_v51 = vmul.u32.u64.high %v266_v45, %v265_v49, %v871_v50 }
  0xb0   : > { %v276_v55 = vadd.s32 1, %v875_v53 }
  0xb1   : > { %vm275_vm5 = vc.u32 %v872_v51, %v874_v52  ;;  %v274_v5 = vadd.s32 %v874_v52, %v872_v51 }
  0xb2   : > { %v277_v57 = vsel %vm275_vm5, %v276_v55, %v875_v53 }
  0xb3   : > { %v278_v58 = vadd.s32 %v277_v57, %v273_v56 }
  0xb5   : > { %v279_v59 = vadd.s32 536870912, %v278_v58 }
  0xb7   : > { %v280_v60 = vshrl.u32 %v279_v59, 30 }
  0xb9   : > { %v281_v61 = vshll.u32 %v280_v60, 30  ;;  %v304_v19 = vsub.s32 4, %v280_v60 }
  0xbb   : > { %v282_v62 = vsub.s32 %v278_v58, %v281_v61  ;;  %v305_v22 = vsel %vm220_vm7, %v304_v19, %v280_v60 }
  0xbc   : > { %v307_v23 = vsel %vm219_vm8, 0, %v305_v22 }
  0xbd   : > { %v284_v63 = vsub.s32 0, %v282_v62  ;;  %v416_v24 = vadd.s32 3, %v307_v23  ;;  %v311_v25 = vand.u32 3, %v307_v23 }
  0xbf   : > { %v576_v0 = vmin.u32 %v284_v63, %v282_v62  ;;  %v417_v26 = vand.u32 3, %v416_v24  ;;  %vm316_vm9 = vcmp.eq.s32.totalorder %v311_v25, 2  ;;  %vm313_vm12 = vcmp.eq.s32.totalorder %v311_v25, 0 }
  0xc0   : > { %vm312_vm14 = vcmp.lt.s32.totalorder %v311_v25, 2 }
  0xc1   : > { %v286_v1 = vclz %v576_v0  ;;  %vm422_vm11 = vcmp.eq.s32.totalorder %v417_v26, 2  ;;  %vm419_vm13 = vcmp.eq.s32.totalorder %v417_v26, 0  ;;  %vm418_vm15 = vcmp.lt.s32.totalorder %v417_v26, 2 }
  0xc3   : > { %v577_v2 = vadd.s32 4294967294, %v286_v1 }
  0xc5   : > { %vm578_vm6 = vcmp.lt.s32.totalorder %v577_v2, 0 }
  0xc6   : > { %v289_v3 = vsel %vm578_vm6, 0, %v577_v2 }
  0xc7   : > { %v290_v6 = vsub.s32 32, %v289_v3  ;;  %v294_v7 = vsub.s32 4294967266, %v289_v3  ;;  %v291_v8 = vshll.u32 %v282_v62, %v289_v3 }
  0xc9   : > { %v292_v10 = vshrl.u32 %v274_v5, %v290_v6  ;;  %v295_v11 = vadd.s32 127, %v294_v7 }
  0xcb   : > { %v293_v12 = vor.u32 %v292_v10, %v291_v8  ;;  %v296_v13 = vshll.u32 %v295_v11, 23 }
  0xcd   : > { %v297_v14 = vor.u32 4788187, %v296_v13  ;;  %v300_v16 = vcvt.s32.f32 %v293_v12 }
  0xcf   : > { %v298_v15 = vand.u32 2147483647, %v297_v14 }
  0xd1   : > { %v301_v17 = vmul.f32 %v300_v16, %v298_v15 }
  0xd3   : > { %v302_v18 = vxor.u32 2147483648, %v301_v17 }
  0xd5   : > { %v303_v20 = vsel %vm220_vm7, %v302_v18, %v301_v17 }
  0xd6   : > { %v306_v21 = vsel %vm219_vm8, %v865_v4, %v303_v20 }
  0xd7   : > { %661 = vcosq.f32 %v306_v21 }
  0xd8   : > { %663 = vsinq.f32 %v306_v21 }
  0xe4   : > { %v662_v27 = vpop.eup %661 }
  0xe5   : > { %v664_v28 = vpop.eup %663  ;;  %v317_v29 = vxor.u32 2147483648, %v662_v27 }
  0xe6   : > { %v314_v30 = vxor.u32 2147483648, %v664_v28 }
  0xe7   : > { %v318_v9 = vsel %vm316_vm9, %v317_v29, %v664_v28  ;;  %v424_v31 = vsel %vm422_vm11, %v317_v29, %v664_v28 }
  0xe8   : > { %v315_v32 = vsel %vm313_vm12, %v662_v27, %v314_v30  ;;  %v421_v33 = vsel %vm419_vm13, %v662_v27, %v314_v30 }
  0xe9   : > { %v319_v34 = vsel %vm312_vm14, %v315_v32, %v318_v9  ;;  %v425_v35 = vsel %vm418_vm15, %v421_v33, %v424_v31 }
  0xea   : > { %v320_v36 = vsel %vm310_vm0, nan, %v319_v34  ;;  %v426_v37 = vsel %vm310_vm0, nan, %v425_v35 }
  0xeb   : > { %322 = vst.msk [vmem:[%s189_s9] sm:$0xff] %vm321_vm10, %v320_v36  ;;  %427 = vst.msk [vmem:[%s196_s11] sm:$0xff] %vm321_vm10, %v426_v37 }
  0xec   : > { %678 = shalt.err (!%p675_p5)
}
  0xed   : > { %s679_s7 = scalar_lea.hbm %s893_s23, 128  ;;  %s683_s11 = scalar_lea.hbm %s973_s2, 256 }
  0xee   : > { %p680_p6 = scmp.ne.s32.totalorder %s893_s23, %s679_s7  ;;  %p684_p10 = scmp.lt.s32.totalorder %s893_s23, %s973_s2 }
  0xef   : > { %p685_p11 = scmp.lt.s32.totalorder %s683_s11, %s679_s7 }
  0xf0   : > { %p681_p7 = pnand %p680_p6, %p842_p4 }
  0xf1   : > { %p686_p12 = por %p685_p11, %p684_p10 }
  0xf2   : > { %p682_p9 = pneg %p681_p7 }
  0xf4   : > { %p687_p13 = pnand %p686_p12, %p682_p9 }
  0xf6   : > { %690 = shalt.err (!%p687_p13)
}
  0xf7   : > { %593 = dma.vmem_to_hbm [thread:$0]  (%p842_p4), %s896_s10, 128, %s893_s23, %s429_s28  }
  0xf8   : > { %s434_s15 = scalar_lea.sflag [#allocation5], %s886_s6  ;;  %s691_s26 = scalar_lea.vmem %s903_s18, 128 }
  0xf9   : > { %p692_p0 = scmp.ne.s32.totalorder %s903_s18, %s691_s26  ;;  %s781_s29 = smov [#allocation4]  }
  0xfa   : > { %s695_s30 = sshll.u32 %s781_s29, 4  ;;  %s696_s30 = int_to_ptr.vmem [resolvable:$false] %s695_s30 }
  0xfb   : > { %p693_p1 = pnand %p692_p0, %p842_p4  ;;  %s697_s4 = scalar_lea.vmem %s696_s30, 256 }
  0xfc   : > { %p698_p3 = scmp.lt.s32.totalorder %s903_s18, %s696_s30  ;;  %p699_p5 = scmp.lt.s32.totalorder %s697_s4, %s691_s26 }
  0xfd   : > { %p694_p2 = pneg %p693_p1 }
  0xfe   : > { %p700_p6 = por %p699_p5, %p698_p3 }
 0x100   : > { %p701_p7 = pnand %p700_p6, %p694_p2 }
 0x102   : > { %704 = shalt.err (!%p701_p7)
}
 0x103   : > { %s705_s10 = scalar_lea.hbm %s901_s27, 128  ;;  %s709_s28 = scalar_lea.hbm %s974_s3, 256 }
 0x104   : > { %p706_p9 = scmp.ne.s32.totalorder %s901_s27, %s705_s10  ;;  %p710_p12 = scmp.lt.s32.totalorder %s901_s27, %s974_s3 }
 0x105   : > { %p711_p13 = scmp.lt.s32.totalorder %s709_s28, %s705_s10 }
 0x106   : > { %p707_p10 = pnand %p706_p9, %p842_p4 }
 0x107   : > { %p712_p0 = por %p711_p13, %p710_p12 }
 0x108   : > { %p708_p11 = pneg %p707_p10 }
 0x10a   : > { %p713_p1 = pnand %p712_p0, %p708_p11 }
 0x10c   : > { %716 = shalt.err (!%p713_p1)
}
 0x10d   : > { %594 = dma.vmem_to_hbm [thread:$0]  (%p842_p4), %s903_s18, 128, %s901_s27, %s434_s15  }
 0x10e PF: > { %p604_p2 = scmp.ge.s32.totalorder %s771_s17, 2  ;;  %s474_s8 = sand.u32 1, %s751_s12  }
 0x10f   : > { %s475_s9 = scalar_lea.sflag [#allocation3], %s474_s8 }
 0x110   : > { %p598_p3 = pnand %p604_p2, %p849_p8 }
 0x112   : > { %p599_p5 = pneg %p598_p3 }
 0x114   : > { %742 = dma.done.wait (%p599_p5), %s475_s9, 128  }
 0x115   : > { %744 = vsyncadd (%p599_p5), %s475_s9, 4294967168  ;;  %s484_s11 = scalar_lea.sflag [#allocation5], %s474_s8 }
 0x116   : > { %746 = dma.done.wait (%p599_p5), %s484_s11, 128  }
 0x117   : > { %748 = vsyncadd (%p599_p5), %s484_s11, 4294967168  ;;  %s20_s17 = sadd.s32 1, %s771_s17   ;;  %s977_s12 = smov %s755_s13 }
 0x118   : > { %p17_p6 = scmp.ge.s32.totalorder %s20_s17, 4   ;;  %s978_s13 = smov %s759_s14 }
 0x119   : > { %s979_s14 = smov %s855_s25  ;;  %s980_s15 = smov %s767_s16 }
 0x11a   : > { %s981_s16 = smov %s983_s20  ;;  %19 = sbr.rel (!%p17_p6) target bundleno = 6 (0x6), region = 80 }
 0x11f   :  { %489 = vsyncpa [#allocation3], 1 }
 0x120   :  { %491 = vsyncpa [#allocation3 + $0x1], 1 }
 0x121   :  { %492 = vsyncpa [#allocation5], 1 }
 0x122   :  { %494 = vsyncpa [#allocation5 + $0x1], 1 }

</bundles_post_ra>
